<compile_context>
chip_gen: v7x
topology: tpu7x:2x2x1
jax: 0.10.0
libtpu: 0.0.40
codegen_flags: <defaults>
</compile_context>

<pallas_src>
import jax
import jax.numpy as jnp
from jax import lax
from jax.experimental import pallas as pl
from jax.experimental.pallas import tpu as pltpu


def _round_up(x: int, m: int) -> int:
    return (x + m - 1) // m * m


def _linear_kernel(x_ref, w_ref, b_ref, o_ref):
    k = pl.program_id(2)

    @pl.when(k == 0)
    def _():
        # Bias-init the VMEM-resident f32 output tile (acts as the accumulator).
        o_ref[...] = jnp.broadcast_to(b_ref[...], o_ref.shape)

    # [tm, tk] (bf16) @ [tk, tn] (bf16) on the MXU, f32 accumulation.
    o_ref[...] += jnp.dot(
        x_ref[...], w_ref[...], preferred_element_type=jnp.float32
    )


def _pick_tiles(B: int, d_in: int, d_out: int):
    tm = min(256, _round_up(B, 16))        # 16-row sublane tile for bf16 x
    tn = min(512, _round_up(d_out, 128))   # lane-dense output
    tk = min(2048, _round_up(d_in, 128))   # long K tile -> few reduction steps
    # v7x megacore: if the M axis has a single block, try to give the N axis
    # at least 2 blocks so both TensorCores get parallel work.
    if _round_up(B, tm) // tm == 1 and _round_up(d_out, tn) // tn == 1 and d_out >= 256:
        tn = _round_up(_round_up(d_out, 128) // 2, 128)
    return tm, tn, tk


def _vmem_limit_bytes(tm: int, tn: int, tk: int, in_itemsize: int) -> int:
    # Double-buffered x/W tiles (bf16) + bias + f32 output tile.
    tile_bytes = (
        2 * tm * tk * in_itemsize
        + 2 * tk * tn * in_itemsize
        + 2 * tn * 4
        + 2 * tm * tn * 4
    )
    try:
        physical = int(pltpu.get_tpu_info().vmem_capacity_bytes)
    except Exception:
        physical = 64 * 1024 * 1024  # conservative (v7x per-TC)
    cap = int(0.75 * physical)       # leave Mosaic internal-scratch headroom
    want = max(32 * 1024 * 1024, 4 * tile_bytes)  # clears v5e 16 MiB default
    return min(want, cap)


def output_layer(
    x: jax.Array,
    weight: jax.Array,
    bias: jax.Array,
    *,
    compute_dtype=jnp.bfloat16,
    force_pallas: bool = False,
) -> jax.Array:
    """Equivalent of PyTorch nn.Linear forward.

    Args:
      x:      [B, D_in]      float32
      weight: [D_out, D_in]  (PyTorch layout) float32
      bias:   [D_out]        float32
    Returns:
      [B, D_out] in x.dtype
    """
    B, d_in = x.shape
    d_out, d_in_w = weight.shape
    assert d_in_w == d_in, "weight must be [D_out, D_in] (PyTorch layout)"
    out_dtype = x.dtype

    flops = 2 * B * d_in * d_out
    if not force_pallas and flops < (1 << 20):
        # Tiny problems: a standalone kernel loses to fused XLA.
        return (x @ weight.T + bias).astype(out_dtype)

    tm, tn, tk = _pick_tiles(B, d_in, d_out)
    Bp = _round_up(B, tm)
    Kp = _round_up(d_in, tk)
    Np = _round_up(d_out, tn)

    # One cast (+transpose) pass over the operands; padding is a no-op for
    # already-aligned production shapes.
    xc = x.astype(compute_dtype)
    wt = weight.T.astype(compute_dtype)          # [d_in, d_out]
    if (Bp, Kp) != (B, d_in):
        xc = jnp.pad(xc, ((0, Bp - B), (0, Kp - d_in)))
    if (Kp, Np) != (d_in, d_out):
        wt = jnp.pad(wt, ((0, Kp - d_in), (0, Np - d_out)))
    b2 = bias.astype(jnp.float32).reshape(1, d_out)
    if Np != d_out:
        b2 = jnp.pad(b2, ((0, 0), (0, Np - d_out)))

    grid = (Bp // tm, Np // tn, Kp // tk)
    in_itemsize = 2 if compute_dtype == jnp.bfloat16 else 4

    cost = pl.CostEstimate(
        flops=flops,
        transcendentals=0,
        bytes_accessed=in_itemsize * (B * d_in + d_in * d_out)
        + 4 * (d_out + B * d_out),
    )

    out = pl.pallas_call(
        _linear_kernel,
        out_shape=jax.ShapeDtypeStruct((Bp, Np), jnp.float32),
        grid_spec=pltpu.PrefetchScalarGridSpec(
            num_scalar_prefetch=0,
            grid=grid,
            in_specs=[
                pl.BlockSpec((tm, tk), lambda i, j, k: (i, k)),  # x   [Bp, Kp]
                pl.BlockSpec((tk, tn), lambda i, j, k: (k, j)),  # W^T [Kp, Np]
                pl.BlockSpec((1, tn), lambda i, j, k: (0, j)),   # bias [1, Np]
            ],
            out_specs=pl.BlockSpec((tm, tn), lambda i, j, k: (i, j)),
        ),
        compiler_params=pltpu.CompilerParams(
            dimension_semantics=("parallel", "parallel", "arbitrary"),
            vmem_limit_bytes=_vmem_limit_bytes(tm, tn, tk, in_itemsize),
        ),
        cost_estimate=cost,
    )(xc, wt, b2)

    if (Bp, Np) != (B, d_out):
        out = out[:B, :d_out]
    return out.astype(out_dtype)


if __name__ == "__main__":
    # Small shapes consistent with the module: per-frame features.
    B = 8       # batch of frames
    D_IN = 32   # input_dimension
    D_OUT = 16  # output_dimension

    key = jax.random.PRNGKey(0)
    kx, kw, kb = jax.random.split(key, 3)

    # Deterministic init mimicking nn.Linear default U[-1/sqrt(in), 1/sqrt(in)].
    bound = 1.0 / jnp.sqrt(jnp.float32(D_IN))
    weight = jax.random.uniform(kw, (D_OUT, D_IN), jnp.float32, -bound, bound)
    bias = jax.random.uniform(kb, (D_OUT,), jnp.float32, -bound, bound)
    x = jax.random.normal(kx, (B, D_IN), jnp.float32)

    # Force the Pallas path (the small-problem bypass would otherwise pick XLA).
    y = output_layer(x, weight, bias, force_pallas=True)
    jax.block_until_ready(y)

    # Reference 1: inputs rounded to bf16, f32 math -> should match tightly.
    x_bf = x.astype(jnp.bfloat16).astype(jnp.float32)
    w_bf = weight.astype(jnp.bfloat16).astype(jnp.float32)
    y_ref_bf16_in = x_bf @ w_bf.T + bias
    # Reference 2: full f32 -> loose check (input rounding only, accum is f32).
    y_ref_f32 = x @ weight.T + bias

    assert y.shape == (B, D_OUT) and y.dtype == x.dtype
    assert jnp.allclose(y, y_ref_bf16_in, atol=1e-4, rtol=1e-4)
    assert jnp.allclose(y, y_ref_f32, atol=3e-2, rtol=3e-2)

    print("KERNEL_OK")
</pallas_src>

<mosaic_0001>
module attributes {stable_mosaic.version = 11 : i64} {
  func.func @_linear_kernel(%arg0: i32, %arg1: i32, %arg2: i32, %arg3: memref<16x128xbf16, #tpu.memory_space<vmem>>, %arg4: memref<128x128xbf16, #tpu.memory_space<vmem>>, %arg5: memref<1x128xf32, #tpu.memory_space<vmem>>, %arg6: memref<16x128xf32, #tpu.memory_space<vmem>>) attributes {dimension_semantics = [#tpu.dimension_semantics<parallel>, #tpu.dimension_semantics<parallel>, #tpu.dimension_semantics<arbitrary>], iteration_bounds = array<i64: 1, 1, 1>, scalar_prefetch = 0 : i64, scratch_operands = 0 : i64, tpu.core_type = #tpu.core_type<tc>, window_params = [{transform_indices = @transform_0, window_bounds = array<i64: 16, 128>}, {transform_indices = @transform_1, window_bounds = array<i64: 128, 128>}, {transform_indices = @transform_2, window_bounds = array<i64: 1, 128>}, {transform_indices = @transform_3, window_bounds = array<i64: 16, 128>}]} {
    %c0_i32 = arith.constant 0 : i32
    %0 = arith.cmpi eq, %arg2, %c0_i32 : i32
    %1 = arith.extui %0 : i1 to i32
    %c0_i32_0 = arith.constant 0 : i32
    %2 = arith.cmpi ne, %1, %c0_i32_0 : i32
    scf.if %2 {
      %c0_8 = arith.constant 0 : index
      %c0_9 = arith.constant 0 : index
      %9 = vector.load %arg5[%c0_8, %c0_9] : memref<1x128xf32, #tpu.memory_space<vmem>>, vector<1x128xf32>
      %10 = vector.shape_cast %9 : vector<1x128xf32> to vector<1x128xf32>
      %11 = vector.broadcast %10 : vector<1x128xf32> to vector<16x128xf32>
      %c0_10 = arith.constant 0 : index
      %c0_11 = arith.constant 0 : index
      %12 = vector.load %arg6[%c0_10, %c0_11] : memref<16x128xf32, #tpu.memory_space<vmem>>, vector<16x128xf32>
      tpu.vector_store %arg6[%c0_10, %c0_11], %11 {strides = array<i32>} : memref<16x128xf32, #tpu.memory_space<vmem>>, vector<16x128xf32>,
    } else {
    }
    %c0 = arith.constant 0 : index
    %c0_1 = arith.constant 0 : index
    %3 = vector.load %arg6[%c0, %c0_1] : memref<16x128xf32, #tpu.memory_space<vmem>>, vector<16x128xf32>
    %c0_2 = arith.constant 0 : index
    %c0_3 = arith.constant 0 : index
    %4 = vector.load %arg3[%c0_2, %c0_3] : memref<16x128xbf16, #tpu.memory_space<vmem>>, vector<16x128xbf16>
    %c0_4 = arith.constant 0 : index
    %c0_5 = arith.constant 0 : index
    %5 = vector.load %arg4[%c0_4, %c0_5] : memref<128x128xbf16, #tpu.memory_space<vmem>>, vector<128x128xbf16>
    %cst = arith.constant dense<0.000000e+00> : vector<16x128xf32>
    %6 = tpu.matmul %4, %5, %cst {dimension_numbers = #tpu.dot_dimension_numbers<[1], [0], [0], [1], [0, 0, 1, 1], [], []>} : vector<16x128xbf16>, vector<128x128xbf16>, vector<16x128xf32> -> vector<16x128xf32>
    %7 = arith.addf %3, %6 : vector<16x128xf32>
    %c0_6 = arith.constant 0 : index
    %c0_7 = arith.constant 0 : index
    %8 = vector.load %arg6[%c0_6, %c0_7] : memref<16x128xf32, #tpu.memory_space<vmem>>, vector<16x128xf32>
    tpu.vector_store %arg6[%c0_6, %c0_7], %7 {strides = array<i32>} : memref<16x128xf32, #tpu.memory_space<vmem>>, vector<16x128xf32>,
    return
  }
  func.func @transform_0(%arg0: i32, %arg1: i32, %arg2: i32) -> (i32, i32) {
    %c0_i32 = arith.constant 0 : i32
    return %arg0, %arg2 : i32, i32
  }
  func.func @transform_1(%arg0: i32, %arg1: i32, %arg2: i32) -> (i32, i32) {
    %c0_i32 = arith.constant 0 : i32
    return %arg2, %arg1 : i32, i32
  }
  func.func @transform_2(%arg0: i32, %arg1: i32, %arg2: i32) -> (i32, i32) {
    %c0_i32 = arith.constant 0 : i32
    %c0_i32_0 = arith.constant 0 : i32
    return %c0_i32, %arg1 : i32, i32
  }
  func.func @transform_3(%arg0: i32, %arg1: i32, %arg2: i32) -> (i32, i32) {
    %c0_i32 = arith.constant 0 : i32
    return %arg0, %arg1 : i32, i32
  }
}

</mosaic_0001>

<bundles_post_ra>
// kernel: tpu_custom_call.1
= control target key start
LH: loop header
LB: loop body
LE: loop exit
PB: predicated region body
PF: predicated region fallthrough
CT: control target
= control target key end

     0   :  { %8 = vsyncpa [#allocation3], 0  ;;  %s391_s0 = inlined_call_operand.hbm [shape: bf16[16,128], index: 0, kind: input, shape index: {}]   ;;  %s392_s1 = inlined_call_operand.hbm [shape: bf16[128,128], index: 1, kind: input, shape index: {}]   ;;  %s393_s2 = inlined_call_operand.vmem [shape: f32[1,128], index: 2, kind: input, shape index: {}]   ;;  %s394_s3 = inlined_call_operand.hbm [shape: f32[16,128], index: 3, kind: output, shape index: {}]  }
   0x1   :  { %9 = vsyncpa [#allocation6], 0 }
   0x2   :  { %10 = vsyncpa [#allocation4], 0  ;;  %s323_s12 = smov [#allocation2]   ;;  %s251_s16 = scalar_lea.hbm %s391_s0, 128 }
   0x3   :  { %s16_s13 = sshll.u32 %s323_s12, 4  ;;  %p252_p0 = scmp.ne.s32.totalorder %s391_s0, %s251_s16  ;;  %s17_s13 = int_to_ptr.vmem [resolvable:$true] %s16_s13 }
   0x4   :  { %p255_p1 = scmp.lt.u32.totalorder %s251_s16, %s391_s0 }
   0x6   :  { %p257_p2 = pnand %p255_p1, %p252_p0 }
   0x8   :  { %260 = shalt.err (!%p257_p2)
}
   0x9   :  { %s261_s21 = scalar_lea.vmem %s17_s13, 128  ;;  %p266_p4 = scmp.lt.s32.totalorder %s17_s13, %s17_s13 }
   0xa   :  { %p262_p3 = scmp.ne.s32.totalorder %s17_s13, %s261_s21  ;;  %p267_p5 = scmp.lt.s32.totalorder %s261_s21, %s261_s21 }
   0xc   :  { %p268_p6 = por %p267_p5, %p266_p4 }
   0xe   :  { %p269_p7 = pnand %p268_p6, %p262_p3 }
  0x10   :  { %272 = shalt.err (!%p269_p7)
}
  0x11   :  { %s324_s22 = smov 64   ;;  %s325_s23 = smov 4  }
  0x12   :  { %22 = dma.hbm_to_vmem [thread:$0]  %s391_s0, 128, %s17_s13, [#allocation3], %s324_s22, %s324_s22, %s325_s23  }
  0x13   :  { %s326_s26 = smov [#allocation5]   ;;  %s273_s30 = scalar_lea.hbm %s392_s1, 1024 }
  0x14   :  { %s28_s27 = sshll.u32 %s326_s26, 4  ;;  %p274_p8 = scmp.ne.s32.totalorder %s392_s1, %s273_s30  ;;  %s29_s27 = int_to_ptr.vmem [resolvable:$true] %s28_s27 }
  0x15   :  { %p277_p9 = scmp.lt.u32.totalorder %s273_s30, %s392_s1 }
  0x17   :  { %p279_p10 = pnand %p277_p9, %p274_p8 }
  0x19   :  { %282 = shalt.err (!%p279_p10)
}
  0x1a   :  { %s283_s8 = scalar_lea.vmem %s29_s27, 1024  ;;  %p288_p12 = scmp.lt.s32.totalorder %s29_s27, %s29_s27 }
  0x1b   :  { %p284_p11 = scmp.ne.s32.totalorder %s29_s27, %s283_s8  ;;  %p289_p13 = scmp.lt.s32.totalorder %s283_s8, %s283_s8 }
  0x1d   :  { %p290_p0 = por %p289_p13, %p288_p12 }
  0x1f   :  { %p291_p1 = pnand %p290_p0, %p284_p11 }
  0x21   :  { %294 = shalt.err (!%p291_p1)
}
  0x22   :  { %34 = dma.hbm_to_vmem [thread:$0]  %s392_s1, 1024, %s29_s27, [#allocation6], %s324_s22, %s324_s22, %s325_s23  }
  0x23   :  { %317 = dma.done.wait [#allocation3], 128  }
  0x24   :  { %318 = vsyncadd [#allocation3], 4294967168 }
  0x25   :  { %319 = dma.done.wait [#allocation6], 1024  }
  0x26   :  { %320 = vsyncadd [#allocation6], 4294966272  ;;  %v327_v0 = vmov 0.0   ;;  %vm328_vm0 = vmmov 0   ;;  %v242_v1 = vld [vmem:[#allocation5] sm:$0xff]   ;;  %v243_v2 = vld [vmem:[#allocation5 + $0x8] sm:$0xff]  }
  0x27   :  { %213 = vmatprep.subr.bf16.mxu0 %v327_v0  ;;  %229 = vmatprep.mubr.msk.bf16.mxu0 %vm328_vm0, %v327_v0  ;;  %v244_v3 = vld [vmem:[#allocation5 + $0x10] sm:$0xff]   ;;  %v245_v4 = vld [vmem:[#allocation5 + $0x18] sm:$0xff]   ;;  %v246_v5 = vld [vmem:[#allocation5 + $0x20] sm:$0xff]   ;;  %s329_s11 = smov [#allocation7]  }
  0x28   :  { %214 = vmatpush3.bf16.msra.mxu0 %v242_v1  ;;  %v247_v6 = vld [vmem:[#allocation5 + $0x28] sm:$0xff]   ;;  %v248_v7 = vld [vmem:[#allocation5 + $0x30] sm:$0xff]   ;;  %v249_v8 = vld [vmem:[#allocation5 + $0x38] sm:$0xff]   ;;  %s181_s12 = sshll.u32 %s329_s11, 4  ;;  %s182_s12 = int_to_ptr.vmem [resolvable:$true] %s181_s12 }
  0x29   :  { %215 = vmatprep.subr.bf16.mxu0 %v327_v0  ;;  %v250_v9 = vld [vmem:[#allocation2] sm:$0xff]   ;;  %s295_s13 = scalar_lea.vmem %s182_s12, 256  ;;  %p300_p3 = scmp.lt.s32.totalorder %s182_s12, %s182_s12 }
  0x2a   :  { %v194_v10 = vld [vmem:[%s393_s2] ss:$0 sm:$0xff]  ;;  %p296_p2 = scmp.ne.s32.totalorder %s182_s12, %s295_s13  ;;  %p301_p4 = scmp.lt.s32.totalorder %s295_s13, %s295_s13 }
  0x2c   :  { %216 = vmatpush3.bf16.msra.mxu0 %v243_v2  ;;  %p302_p5 = por %p301_p4, %p300_p3 }
  0x2d   :  { %217 = vmatprep.subr.bf16.mxu0 %v327_v0 }
  0x2e   :  { %p303_p6 = pnand %p302_p5, %p296_p2 }
  0x30   :  { %218 = vmatpush3.bf16.msra.mxu0 %v244_v3 }
  0x31   :  { %219 = vmatprep.subr.bf16.mxu0 %v327_v0 }
  0x34   :  { %220 = vmatpush3.bf16.msra.mxu0 %v245_v4 }
  0x35   :  { %221 = vmatprep.subr.bf16.mxu0 %v327_v0 }
  0x38   :  { %222 = vmatpush3.bf16.msra.mxu0 %v246_v5 }
  0x39   :  { %223 = vmatprep.subr.bf16.mxu0 %v327_v0 }
  0x3c   :  { %224 = vmatpush3.bf16.msra.mxu0 %v247_v6 }
  0x3d   :  { %225 = vmatprep.subr.bf16.mxu0 %v327_v0 }
  0x40   :  { %226 = vmatpush3.bf16.msra.mxu0 %v248_v7 }
  0x41   :  { %227 = vmatprep.subr.bf16.mxu0 %v327_v0 }
  0x44   :  { %228 = vmatpush3.bf16.msra.mxu0 %v249_v8 }
  0x47   :  { %230 = vmatmul.mubr.bf16.vlgmr.msra.gmra.mrb[0].mxu0 %v250_v9 }
 0x11a   :  { %v165_v11 = vpop.f32.mrb[0].mxu0 }
 0x11b   :  { %v172_v12 = vadd.f32 %v194_v10, %v165_v11  ;;  %v231_v13 = vpop.f32.mrb[1].mxu0 }
 0x11c   :  { %v168_v14 = vpop.f32.mrb[2].mxu0 }
 0x11d   :  { %174 = vst [vmem:[#allocation7] sm:$0xff] %v172_v12  ;;  %v173_v15 = vadd.f32 %v194_v10, %v168_v14  ;;  %v232_v16 = vpop.f32.mrb[3].mxu0 }
 0x11f   :  { %175 = vst [vmem:[#allocation7 + $0x8] sm:$0xff] %v173_v15 }
 0x120   :  { %306 = shalt.err (!%p303_p6)
}
 0x121   :  { %s307_s15 = scalar_lea.hbm %s394_s3, 256 }
 0x122   :  { %p308_p7 = scmp.ne.s32.totalorder %s394_s3, %s307_s15  ;;  %p311_p8 = scmp.lt.u32.totalorder %s307_s15, %s394_s3 }
 0x124   :  { %p313_p9 = pnand %p311_p8, %p308_p7 }
 0x126   :  { %316 = shalt.err (!%p313_p9)
}
 0x127   :  { %s330_s20 = smov 128   ;;  %s331_s21 = smov 8  }
 0x128   :  { %187 = dma.vmem_to_hbm [thread:$0]  %s182_s12, 256, %s394_s3, [#allocation4], %s330_s20, %s330_s20, %s331_s21  }
 0x129   :  { %321 = dma.done.wait [#allocation4], 256  }
 0x12a   :  { %322 = vsyncadd [#allocation4], 4294967040 }
 0x12b   :  { %191 = vsyncpa [#allocation3], 1 }
 0x12c   :  { %192 = vsyncpa [#allocation6], 1 }
 0x12d   :  { %193 = vsyncpa [#allocation4], 1 }

</bundles_post_ra>
